<compile_context>
chip_gen: v6e
topology: v6e:2x2x1
jax: 0.10.0
libtpu: 0.0.40
codegen_flags: <defaults>
</compile_context>

<pallas_src>
import functools
import math

import jax
import jax.numpy as jnp
from jax import lax
from jax.experimental import pallas as pl
from jax.experimental.pallas import tpu as pltpu


def _graph_filter_kernel(x_ref, s_ref, w0_ref, wr_ref, b_ref, y_ref, z_ref,
                         *, s_resident):
    # x_ref : (TB*G, Np)        input signal (rows b-major, g-minor), batch-tile resident
    # s_ref : (Np, Np) if s_resident else (Np, TN)   graph shift operator
    # w0_ref: (F, G)            tap-0 weights
    # wr_ref: (F, (K-1)*G)      tap 1..K-1 weights, k-major / g-minor
    # b_ref : (F, 1)            bias
    # y_ref : (TB, F, TN)       output tile (written on the last hop only)
    # z_ref : (K-1, TB*G, Np)   VMEM scratch: shifted taps x @ S^k, k = 1..K-1
    h = pl.program_id(1)                      # hop-1 index: this step builds tap (h+1)
    j = pl.program_id(2)                      # node-column tile
    KH, GT, Np = z_ref.shape                  # KH = K-1
    TB, F, TN = y_ref.shape
    G = w0_ref.shape[1]
    col = pl.multiple_of(j * TN, TN)

    # Column tile of S used by this step (slice of the resident copy, or the
    # streamed tile itself).
    s_cols = s_ref[:, pl.ds(col, TN)] if s_resident else s_ref[...]     # (Np, TN)

    # --- hop recurrence: tap_{h+1}[:, cols_j] = tap_h @ S[:, cols_j]  (one MXU matmul) ---
    @pl.when(h == 0)
    def _():                                  # tap_0 == x, never copied into scratch
        z_ref[0, :, pl.ds(col, TN)] = jnp.dot(
            x_ref[...], s_cols, preferred_element_type=jnp.float32)

    @pl.when(h > 0)
    def _():
        z_ref[h, :, pl.ds(col, TN)] = jnp.dot(
            z_ref[h - 1], s_cols, preferred_element_type=jnp.float32)

    # --- last hop: every tap for this column tile is ready -> fused contraction ---
    @pl.when(h == KH - 1)
    def _():
        xt = x_ref[:, pl.ds(col, TN)].reshape(TB, G, TN)                 # (TB, G, TN)
        zt = z_ref[:, :, pl.ds(col, TN)].reshape(KH, TB, G, TN)
        zt = jnp.swapaxes(zt, 0, 1).reshape(TB, KH * G, TN)              # (TB, (K-1)*G, TN)
        dn = (((2,), (1,)), ((0,), (0,)))                                # batched matmul
        w0b = jnp.broadcast_to(w0_ref[...][None], (TB, F, G))
        wrb = jnp.broadcast_to(wr_ref[...][None], (TB, F, KH * G))
        y = lax.dot_general(w0b, xt, dn, preferred_element_type=jnp.float32)
        y = y + lax.dot_general(wrb, zt, dn, preferred_element_type=jnp.float32)
        y_ref[...] = (y + b_ref[...][None]).astype(y_ref.dtype)


def _vmem_budget_bytes():
    cap = None
    try:
        cap = getattr(pltpu.get_tpu_info(), "vmem_capacity_bytes", None)
    except Exception:
        cap = None
    if not cap:
        cap = 64 * 1024 * 1024          # conservative fallback valid on v5e/v6e/v7x
    return int(cap * 0.85)              # leave headroom for compiler temporaries


def graph_filter_pallas(x, S, weight, bias=None, *, block_n=None, block_b=None,
                        s_resident=None):
    B, G, N = x.shape
    F, K, G2 = weight.shape
    assert G2 == G and S.shape == (N, N)
    if bias is None:
        bias = jnp.zeros((F, 1), jnp.float32)
    assert bias.shape == (F, 1)

    if K == 1:                                   # degenerate: add a zero tap so KH >= 1
        weight = jnp.pad(weight, ((0, 0), (0, 1), (0, 0)))
        K = 2

    LANE = 128
    Np = ((N + LANE - 1) // LANE) * LANE         # lane-dense node dimension
    budget = _vmem_budget_bytes()

    # ---- tile / residency selection against the per-generation VMEM budget ----
    def _fits(tb, tn, resident):
        f32b = 4
        s_buf = 2 * Np * (Np if resident else tn) * f32b      # GSO buffers
        x_buf = 2 * tb * G * Np * f32b                        # input tile (dbl-buffered)
        y_buf = 2 * tb * F * tn * f32b                        # output tile
        z_scr = (K - 1) * tb * G * Np * f32b                  # tap scratch (single copy)
        w_buf = 2 * (F * G + F * (K - 1) * G + F) * f32b
        return s_buf + x_buf + y_buf + z_scr + w_buf <= budget

    tb_candidates = [d for d in range(B, 0, -1)
                     if B % d == 0 and (d == B or (d * G) % 8 == 0)]
    choice = None
    for tb in ([block_b] if block_b is not None else tb_candidates):
        res_opts = ((True, False) if s_resident is None else (bool(s_resident),))
        for res in res_opts:
            tn_opts = ([block_n] if block_n is not None else
                       [t for t in range(min(Np, 1024), 127, -128) if Np % t == 0])
            for tn in tn_opts:
                if _fits(tb, tn, res):
                    choice = (tb, tn, res)
                    break
            if choice:
                break
        if choice:
            break
    if choice is None:      # last resort: smallest tiles, streamed GSO
        choice = (block_b if block_b is not None else tb_candidates[-1],
                  block_n if block_n is not None else 128,
                  bool(s_resident) if s_resident is not None else False)
    TB, TN, s_res = choice
    assert B % TB == 0 and Np % TN == 0 and TN % LANE == 0
    assert TB == B or (TB * G) % 8 == 0, "batch tile must keep (8,128)-clean row blocks"

    f32 = jnp.float32
    # ---- host-side prep (hoisted out of the kernel) ----
    x_p = jnp.pad(x.astype(f32), ((0, 0), (0, 0), (0, Np - N))).reshape(B * G, Np)
    S_p = jnp.pad(S.astype(f32), ((0, Np - N), (0, Np - N)))
    w0 = weight[:, 0, :].astype(f32)                              # (F, G)
    wr = weight[:, 1:, :].reshape(F, (K - 1) * G).astype(f32)     # (F, (K-1)*G), k-major
    b2 = bias.astype(f32)

    KH = K - 1
    J = Np // TN
    grid = (B // TB, KH, J)

    if s_res:
        s_in = S_p
        s_spec = pl.BlockSpec((Np, Np), lambda b, h, j: (0, 0))   # resident: DMA'd once
    else:
        # tile-major host layout -> contiguous column-tile DMAs while streaming
        s_in = S_p.reshape(Np, J, TN).transpose(1, 0, 2)          # (J, Np, TN)
        s_spec = pl.BlockSpec((None, Np, TN), lambda b, h, j: (j, 0, 0))

    # Megacore only when it does not multiply S streaming (>=2 batch tiles + resident S).
    batch_sem = "parallel" if (B // TB > 1 and s_res) else "arbitrary"

    out = pl.pallas_call(
        functools.partial(_graph_filter_kernel, s_resident=s_res),
        out_shape=jax.ShapeDtypeStruct((B, F, Np), f32),
        grid_spec=pltpu.PrefetchScalarGridSpec(
            num_scalar_prefetch=0,
            grid=grid,
            in_specs=[
                # x: resident per batch tile, full (padded) node width.
                pl.BlockSpec((TB * G, Np), lambda b, h, j: (b, 0)),
                s_spec,
                pl.BlockSpec((F, G), lambda b, h, j: (0, 0)),
                pl.BlockSpec((F, KH * G), lambda b, h, j: (0, 0)),
                pl.BlockSpec((F, 1), lambda b, h, j: (0, 0)),
            ],
            # Output tile only advances on the last hop; earlier hops stay pinned to
            # block 0 so no partial/garbage write-backs are issued.  (Relies on Pallas
            # flushing output blocks only on block-index change.)
            out_specs=pl.BlockSpec(
                (TB, F, TN),
                lambda b, h, j: (b, 0, jnp.where(h == KH - 1, j, 0))),
            scratch_shapes=[pltpu.VMEM((KH, TB * G, Np), f32)],
        ),
        compiler_params=pltpu.CompilerParams(
            dimension_semantics=(batch_sem, "arbitrary", "arbitrary"),
            vmem_limit_bytes=int(budget),
        ),
    )(x_p, s_in, w0, wr, b2)

    return out[:, :, :N]


def graph_filter_reference(x, S, weight, bias):
    # Pure-JAX transcription of FilterFunction for verification.
    B, G, N = x.shape
    F, K, _ = weight.shape
    taps = [x]
    xk = x
    for _ in range(1, K):
        xk = xk @ S
        taps.append(xk)
    z = jnp.stack(taps, axis=1)                               # (B, K, G, N)
    zz = z.transpose(0, 3, 1, 2).reshape(B, N, K * G)         # k-major, g-minor
    y = (zz @ weight.reshape(F, K * G).T).transpose(0, 2, 1)  # (B, F, N)
    return y + bias[None, :, :]


if __name__ == "__main__":
    def run_case(key, B, N, G, F, K, **kw):
        k_x, k_s, k_w, k_b = jax.random.split(key, 4)
        # Mirror GraphFilter.reset_parameters: uniform(-stdv, stdv), stdv = 1/sqrt(f_in*K)
        stdv = 1.0 / math.sqrt(G * K)
        weight = jax.random.uniform(k_w, (F, K, G), minval=-stdv, maxval=stdv,
                                    dtype=jnp.float32)
        bias = jax.random.uniform(k_b, (F, 1), minval=-stdv, maxval=stdv,
                                  dtype=jnp.float32)
        S = jax.random.normal(k_s, (N, N), dtype=jnp.float32) / jnp.sqrt(N)
        x = jax.random.normal(k_x, (B, G, N), dtype=jnp.float32)

        y = jax.block_until_ready(graph_filter_pallas(x, S, weight, bias, **kw))
        y_ref = graph_filter_reference(x, S, weight, bias)
        assert y.shape == (B, F, N)
        assert jnp.allclose(y, y_ref, rtol=2e-3, atol=2e-3), \
            f"mismatch vs reference: {jnp.max(jnp.abs(y - y_ref))}"

    key = jax.random.PRNGKey(0)
    k1, k2 = jax.random.split(key)
    # Module-consistent small case: batch=2, nodes=16, f_in=4, f_out=8, K=3 taps.
    run_case(k1, B=2, N=16, G=4, F=8, K=3)
    # Exercise multi-column-tile sweep, node padding and the streamed (pre-tiled) GSO path.
    run_case(k2, B=2, N=300, G=5, F=7, K=4, block_n=128, s_resident=False)

    print("KERNEL_OK")
</pallas_src>

<mosaic_0001>
module attributes {stable_mosaic.version = 11 : i64} {
  func.func @_graph_filter_kernel(%arg0: i32, %arg1: i32, %arg2: i32, %arg3: memref<8x128xf32, #tpu.memory_space<vmem>>, %arg4: memref<128x128xf32, #tpu.memory_space<vmem>>, %arg5: memref<8x4xf32, #tpu.memory_space<vmem>>, %arg6: memref<8x8xf32, #tpu.memory_space<vmem>>, %arg7: memref<8x1xf32, #tpu.memory_space<vmem>>, %arg8: memref<2x8x128xf32, #tpu.memory_space<vmem>>, %arg9: memref<2x8x128xf32, #tpu.memory_space<vmem>>) attributes {dimension_semantics = [#tpu.dimension_semantics<arbitrary>, #tpu.dimension_semantics<arbitrary>, #tpu.dimension_semantics<arbitrary>], iteration_bounds = array<i64: 1, 2, 1>, scalar_prefetch = 0 : i64, scratch_operands = 1 : i64, tpu.core_type = #tpu.core_type<tc>, window_params = [{transform_indices = @transform_0, window_bounds = array<i64: 8, 128>}, {pipeline_mode = #tpu.pipeline_mode<synchronous>, transform_indices = @transform_1, window_bounds = array<i64: 128, 128>}, {pipeline_mode = #tpu.pipeline_mode<synchronous>, transform_indices = @transform_2, window_bounds = array<i64: 8, 4>}, {pipeline_mode = #tpu.pipeline_mode<synchronous>, transform_indices = @transform_3, window_bounds = array<i64: 8, 8>}, {pipeline_mode = #tpu.pipeline_mode<synchronous>, transform_indices = @transform_4, window_bounds = array<i64: 8, 1>}, {transform_indices = @transform_5, window_bounds = array<i64: 2, 8, 128>}]} {
    %c128_i32 = arith.constant 128 : i32
    %0 = arith.muli %arg2, %c128_i32 : i32
    %1 = tpu.assume_multiple %0, 128 : i32
    %c0 = arith.constant 0 : index
    %2 = arith.index_cast %1 : i32 to index
    %3 = vector.load %arg4[%c0, %2] : memref<128x128xf32, #tpu.memory_space<vmem>>, vector<128x128xf32>
    %c0_i32 = arith.constant 0 : i32
    %4 = arith.cmpi eq, %arg1, %c0_i32 : i32
    %5 = arith.extui %4 : i1 to i32
    %c0_i32_0 = arith.constant 0 : i32
    %6 = arith.cmpi ne, %5, %c0_i32_0 : i32
    scf.if %6 {
      %c0_4 = arith.constant 0 : index
      %c0_5 = arith.constant 0 : index
      %13 = vector.load %arg3[%c0_4, %c0_5] : memref<8x128xf32, #tpu.memory_space<vmem>>, vector<8x128xf32>
      %cst = arith.constant dense<0.000000e+00> : vector<8x128xf32>
      %14 = tpu.matmul %13, %3, %cst {dimension_numbers = #tpu.dot_dimension_numbers<[1], [0], [0], [1], [0, 0, 1, 1], [], []>} : vector<8x128xf32>, vector<128x128xf32>, vector<8x128xf32> -> vector<8x128xf32>
      %c0_6 = arith.constant 0 : index
      %c0_7 = arith.constant 0 : index
      %15 = arith.index_cast %1 : i32 to index
      %16 = vector.load %arg9[%c0_6, %c0_7, %15] : memref<2x8x128xf32, #tpu.memory_space<vmem>>, vector<1x8x128xf32>
      %17 = vector.shape_cast %16 : vector<1x8x128xf32> to vector<8x128xf32>
      %18 = vector.shape_cast %14 : vector<8x128xf32> to vector<1x8x128xf32>
      tpu.vector_store %arg9[%c0_6, %c0_7, %15], %18 {strides = array<i32>} : memref<2x8x128xf32, #tpu.memory_space<vmem>>, vector<1x8x128xf32>,
    } else {
    }
    %c0_i32_1 = arith.constant 0 : i32
    %7 = arith.cmpi sgt, %arg1, %c0_i32_1 : i32
    %8 = arith.extui %7 : i1 to i32
    %c0_i32_2 = arith.constant 0 : i32
    %9 = arith.cmpi ne, %8, %c0_i32_2 : i32
    scf.if %9 {
      %c1_i32_4 = arith.constant 1 : i32
      %13 = arith.subi %arg1, %c1_i32_4 : i32
      %14 = arith.index_cast %13 : i32 to index
      %c0_5 = arith.constant 0 : index
      %c0_6 = arith.constant 0 : index
      %15 = vector.load %arg9[%14, %c0_5, %c0_6] : memref<2x8x128xf32, #tpu.memory_space<vmem>>, vector<1x8x128xf32>
      %16 = vector.shape_cast %15 : vector<1x8x128xf32> to vector<8x128xf32>
      %cst = arith.constant dense<0.000000e+00> : vector<8x128xf32>
      %17 = tpu.matmul %16, %3, %cst {dimension_numbers = #tpu.dot_dimension_numbers<[1], [0], [0], [1], [0, 0, 1, 1], [], []>} : vector<8x128xf32>, vector<128x128xf32>, vector<8x128xf32> -> vector<8x128xf32>
      %18 = arith.index_cast %arg1 : i32 to index
      %c0_7 = arith.constant 0 : index
      %19 = arith.index_cast %1 : i32 to index
      %20 = vector.load %arg9[%18, %c0_7, %19] : memref<2x8x128xf32, #tpu.memory_space<vmem>>, vector<1x8x128xf32>
      %21 = vector.shape_cast %20 : vector<1x8x128xf32> to vector<8x128xf32>
      %22 = vector.shape_cast %17 : vector<8x128xf32> to vector<1x8x128xf32>
      tpu.vector_store %arg9[%18, %c0_7, %19], %22 {strides = array<i32>} : memref<2x8x128xf32, #tpu.memory_space<vmem>>, vector<1x8x128xf32>,
    } else {
    }
    %c1_i32 = arith.constant 1 : i32
    %10 = arith.cmpi eq, %arg1, %c1_i32 : i32
    %11 = arith.extui %10 : i1 to i32
    %c0_i32_3 = arith.constant 0 : i32
    %12 = arith.cmpi ne, %11, %c0_i32_3 : i32
    scf.if %12 {
      %c0_4 = arith.constant 0 : index
      %13 = arith.index_cast %1 : i32 to index
      %14 = vector.load %arg3[%c0_4, %13] : memref<8x128xf32, #tpu.memory_space<vmem>>, vector<8x128xf32>
      %15 = vector.shape_cast %14 : vector<8x128xf32> to vector<2x4x128xf32>
      %c0_5 = arith.constant 0 : index
      %c0_6 = arith.constant 0 : index
      %16 = arith.index_cast %1 : i32 to index
      %17 = vector.load %arg9[%c0_5, %c0_6, %16] : memref<2x8x128xf32, #tpu.memory_space<vmem>>, vector<2x8x128xf32>
      %18 = vector.shape_cast %17 : vector<2x8x128xf32> to vector<2x2x4x128xf32>
      %19 = tpu.transpose %18, [1, 0, 2, 3] : vector<2x2x4x128xf32> -> vector<2x2x4x128xf32>
      %20 = vector.shape_cast %19 : vector<2x2x4x128xf32> to vector<2x8x128xf32>
      %c0_7 = arith.constant 0 : index
      %c0_8 = arith.constant 0 : index
      %21 = vector.load %arg5[%c0_7, %c0_8] : memref<8x4xf32, #tpu.memory_space<vmem>>, vector<8x4xf32>
      %22 = vector.shape_cast %21 : vector<8x4xf32> to vector<1x8x4xf32>
      %23 = vector.shape_cast %22 : vector<1x8x4xf32> to vector<1x8x4xf32>
      %24 = vector.broadcast %23 : vector<1x8x4xf32> to vector<2x8x4xf32>
      %c0_9 = arith.constant 0 : index
      %c0_10 = arith.constant 0 : index
      %25 = vector.load %arg6[%c0_9, %c0_10] : memref<8x8xf32, #tpu.memory_space<vmem>>, vector<8x8xf32>
      %26 = vector.shape_cast %25 : vector<8x8xf32> to vector<1x8x8xf32>
      %27 = vector.shape_cast %26 : vector<1x8x8xf32> to vector<1x8x8xf32>
      %28 = vector.broadcast %27 : vector<1x8x8xf32> to vector<2x8x8xf32>
      %cst = arith.constant dense<0.000000e+00> : vector<2x8x128xf32>
      %29 = tpu.matmul %24, %15, %cst {dimension_numbers = #tpu.dot_dimension_numbers<[2], [1], [1], [2], [0, 0, 0, 1, 1, 2], [0], [0]>} : vector<2x8x4xf32>, vector<2x4x128xf32>, vector<2x8x128xf32> -> vector<2x8x128xf32>
      %cst_11 = arith.constant dense<0.000000e+00> : vector<2x8x128xf32>
      %30 = tpu.matmul %28, %20, %cst_11 {dimension_numbers = #tpu.dot_dimension_numbers<[2], [1], [1], [2], [0, 0, 0, 1, 1, 2], [0], [0]>} : vector<2x8x8xf32>, vector<2x8x128xf32>, vector<2x8x128xf32> -> vector<2x8x128xf32>
      %31 = arith.addf %29, %30 : vector<2x8x128xf32>
      %c0_12 = arith.constant 0 : index
      %c0_13 = arith.constant 0 : index
      %32 = vector.load %arg7[%c0_12, %c0_13] : memref<8x1xf32, #tpu.memory_space<vmem>>, vector<8x1xf32>
      %33 = vector.shape_cast %32 : vector<8x1xf32> to vector<1x8x1xf32>
      %34 = vector.broadcast %33 : vector<1x8x1xf32> to vector<2x8x128xf32>
      %35 = arith.addf %31, %34 : vector<2x8x128xf32>
      %c0_14 = arith.constant 0 : index
      %c0_15 = arith.constant 0 : index
      %c0_16 = arith.constant 0 : index
      %36 = vector.load %arg8[%c0_14, %c0_15, %c0_16] : memref<2x8x128xf32, #tpu.memory_space<vmem>>, vector<2x8x128xf32>
      tpu.vector_store %arg8[%c0_14, %c0_15, %c0_16], %35 {strides = array<i32>} : memref<2x8x128xf32, #tpu.memory_space<vmem>>, vector<2x8x128xf32>,
    } else {
    }
    return
  }
  func.func @transform_0(%arg0: i32, %arg1: i32, %arg2: i32) -> (i32, i32) {
    %c0_i32 = arith.constant 0 : i32
    %c0_i32_0 = arith.constant 0 : i32
    return %arg0, %c0_i32 : i32, i32
  }
  func.func @transform_1(%arg0: i32, %arg1: i32, %arg2: i32) -> (i32, i32) {
    %c0_i32 = arith.constant 0 : i32
    %c0_i32_0 = arith.constant 0 : i32
    %c0_i32_1 = arith.constant 0 : i32
    return %c0_i32, %c0_i32_0 : i32, i32
  }
  func.func @transform_2(%arg0: i32, %arg1: i32, %arg2: i32) -> (i32, i32) {
    %c0_i32 = arith.constant 0 : i32
    %c0_i32_0 = arith.constant 0 : i32
    %c0_i32_1 = arith.constant 0 : i32
    return %c0_i32, %c0_i32_0 : i32, i32
  }
  func.func @transform_3(%arg0: i32, %arg1: i32, %arg2: i32) -> (i32, i32) {
    %c0_i32 = arith.constant 0 : i32
    %c0_i32_0 = arith.constant 0 : i32
    %c0_i32_1 = arith.constant 0 : i32
    return %c0_i32, %c0_i32_0 : i32, i32
  }
  func.func @transform_4(%arg0: i32, %arg1: i32, %arg2: i32) -> (i32, i32) {
    %c0_i32 = arith.constant 0 : i32
    %c0_i32_0 = arith.constant 0 : i32
    %c0_i32_1 = arith.constant 0 : i32
    return %c0_i32, %c0_i32_0 : i32, i32
  }
  func.func @transform_5(%arg0: i32, %arg1: i32, %arg2: i32) -> (i32, i32, i32) {
    %c1_i32 = arith.constant 1 : i32
    %0 = arith.cmpi eq, %arg1, %c1_i32 : i32
    %c0_i32 = arith.constant 0 : i32
    %1 = arith.select %0, %arg2, %c0_i32 : i32
    %c0_i32_0 = arith.constant 0 : i32
    %c0_i32_1 = arith.constant 0 : i32
    return %arg0, %c0_i32_0, %1 : i32, i32, i32
  }
}

</mosaic_0001>

<bundles_post_ra>
// kernel: tpu_custom_call.1
= control target key start
LH: loop header
LB: loop body
LE: loop exit
PB: predicated region body
PF: predicated region fallthrough
CT: control target
= control target key end

     0   :  { %10 = vsyncpa [#allocation4], 0  ;;  %s1360_s0 = inlined_call_operand.vmem [shape: f32[8,128], index: 0, kind: input, shape index: {}]   ;;  %s1361_s1 = inlined_call_operand.hbm [shape: f32[128,128], index: 1, kind: input, shape index: {}]   ;;  %s1362_s2 = inlined_call_operand.vmem [shape: f32[8,4], index: 2, kind: input, shape index: {}]   ;;  %s1363_s3 = inlined_call_operand.vmem [shape: f32[8,8], index: 3, kind: input, shape index: {}]   ;;  %s1364_s4 = inlined_call_operand.vmem [shape: f32[8,1], index: 4, kind: input, shape index: {}]   ;;  %s1365_s5 = inlined_call_operand.hbm [shape: f32[2,8,128], index: 5, kind: output, shape index: {}]  }
   0x1   :  { %11 = vsyncpa [#allocation5], 0 }
   0x2   :  { %13 = vsyncpa [#allocation5 + $0x1], 0  ;;  %s1226_s18 = smov 0   ;;  %s1228_s19 = smov 0  }
   0x3   :  { %s1230_s20 = smov 0  }
   0x4 LB: > { %s882_s21 = sadd.s32 4294967295, %s1181_s20   ;;  %s883_s22 = sadd.s32 4294967294, %s1181_s20   ;;  %s1181_s20 = sphi %s1230_s20, %s19_s20   ;;  %s1177_s19 = sphi %s1228_s19, %s1370_s19   ;;  %s1173_s18 = sphi %s1226_s18, %s1369_s18  }
   0x5   : > { %s34_s23 = sadd.s32 1, %s1177_s19  ;;  %p884_p0 = scmp.ge.s32.totalorder %s1181_s20, 1 }
   0x6   : > { %p36_p1 = scmp.ge.s32.totalorder %s34_s23, 2  ;;  %p185_p2 = scmp.lt.s32.totalorder %s1181_s20, 3 }
   0x7   : > { %p1248_p3 = scmp.eq.s32.totalorder %s882_s21, 0  ;;  %s1183_s26 = smov [#allocation3]  }
   0x8   : > { %s1372_s23 = smov (%p36_p1, %s34_s23), 0  ;;  %p1254_p4 = pnand %p884_p0, %p185_p2 }
   0x9   : > { %s204_s27 = sshll.u32 %s1183_s26, 4  ;;  %s205_s27 = int_to_ptr.vmem [resolvable:$true] %s204_s27 }
   0xa   : > { %p1046_p5 = pneg %p1254_p4  ;;  %s1112_s28 = scalar_lea.vmem %s205_s27, 2048 }
   0xb   : > { %p1113_p8 = scmp.ne.s32.totalorder %s205_s27, %s1112_s28  ;;  %p1120_p11 = scmp.lt.s32.totalorder %s205_s27, %s205_s27 }
   0xc   : > { %p1047_p6 = pnand %p1248_p3, %p1046_p5  ;;  %p1121_p12 = scmp.lt.s32.totalorder %s1112_s28, %s1112_s28 }
   0xe   : > { %p1103_p7 = pneg %p1047_p6  ;;  %p1122_p13 = por %p1121_p12, %p1120_p11 }
  0x10   : > { %p1115_p9 = pnand %p1113_p8, %p1103_p7 }
  0x12   : > { %p1116_p10 = pneg %p1115_p9 }
  0x14   : > { %p1123_p0 = pnand %p1122_p13, %p1116_p10 }
  0x16   : > { %1126 = shalt.err (!%p1123_p0)
}
  0x17   : > { %s1184_s29 = smov 128   ;;  %s1185_s30 = smov 8  }
  0x18   : > { %1049 = dma.hbm_to_vmem [thread:$0]  (!%p1047_p6), %s1361_s1, 2048, %s205_s27, [#allocation4], %s1184_s29, %s1184_s29, %s1185_s30  }
  0x19   : > { %229 = sbr.rel (%p1254_p4) target bundleno = 728 (0x2d8), region = 40 }
  0x1e   : > { %1164 = dma.done.wait (%p1248_p3), [#allocation4], 2048  }
  0x1f   : > { %1166 = vsyncadd (%p1248_p3), [#allocation4], 4294965248  ;;  %v1271_v0 = vld [vmem:[#allocation3] sm:$0xff]  ;;  %v1273_v1 = vld [vmem:[#allocation3 + $0x8] sm:$0xff]  ;;  %p889_p1 = scmp.ne.s32.totalorder %s1173_s18, 0 }
  0x20   : > { %v1275_v2 = vld [vmem:[#allocation3 + $0x10] sm:$0xff]  ;;  %v1277_v3 = vld [vmem:[#allocation3 + $0x18] sm:$0xff]  ;;  %v1279_v4 = vld [vmem:[#allocation3 + $0x20] sm:$0xff] }
  0x21   : > { %v1281_v5 = vld [vmem:[#allocation3 + $0x28] sm:$0xff]  ;;  %v1283_v6 = vld [vmem:[#allocation3 + $0x30] sm:$0xff]  ;;  %v1285_v7 = vld [vmem:[#allocation3 + $0x38] sm:$0xff]  ;;  %286 = sbr.rel (%p889_p1) target bundleno = 266 (0x10a), region = 48 }
  0x22   : > { %v1287_v8 = vld [vmem:[#allocation3 + $0x40] sm:$0xff]  ;;  %v1289_v9 = vld [vmem:[#allocation3 + $0x48] sm:$0xff]  ;;  %v1291_v10 = vld [vmem:[#allocation3 + $0x50] sm:$0xff] }
  0x23   : > { %v278_v11 = vld [vmem:[#allocation3 + $0x58] sm:$0xff]  ;;  %v279_v12 = vld [vmem:[#allocation3 + $0x60] sm:$0xff]  ;;  %v280_v13 = vld [vmem:[#allocation3 + $0x68] sm:$0xff] }
  0x24   : > { %v281_v14 = vld [vmem:[#allocation3 + $0x70] sm:$0xff]  ;;  %v282_v15 = vld [vmem:[#allocation3 + $0x78] sm:$0xff] }
  0x26   : > { %v1186_v16 = vmov 0.0   ;;  %vm1187_vm0 = vmmov 0   ;;  %v287_v17 = vld [vmem:[%s1360_s0] sm:$0xff] }
  0x27   : > { %948 = vmatprep.subr.mxu0 %v1186_v16  ;;  %980 = vmatprep.mubr.msk.f32.mxu0 %vm1187_vm0, %v1186_v16 }
  0x28   : > { %949 = vmatpush3.msra.mxu0 %v282_v15 }
  0x29   : > { %950 = vmatprep.subr.mxu0 %v1186_v16 }
  0x2a   : > { %951 = vmatpush3.msra.mxu0 %v281_v14 }
  0x2b   : > { %952 = vmatprep.subr.mxu0 %v1186_v16 }
  0x2c   : > { %953 = vmatpush3.msra.mxu0 %v280_v13 }
  0x2d   : > { %954 = vmatprep.subr.mxu0 %v1186_v16 }
  0x2e   : > { %955 = vmatpush3.msra.mxu0 %v279_v12 }
  0x2f   : > { %956 = vmatprep.subr.mxu0 %v1186_v16 }
  0x30   : > { %957 = vmatpush3.msra.mxu0 %v278_v11 }
  0x31   : > { %958 = vmatprep.subr.mxu0 %v1186_v16 }
  0x32   : > { %959 = vmatpush3.msra.mxu0 %v1291_v10 }
  0x33   : > { %960 = vmatprep.subr.mxu0 %v1186_v16 }
  0x34   : > { %961 = vmatpush3.msra.mxu0 %v1289_v9 }
  0x35   : > { %962 = vmatprep.subr.mxu0 %v1186_v16 }
  0x36   : > { %963 = vmatpush3.msra.mxu0 %v1287_v8 }
  0x37   : > { %964 = vmatprep.subr.mxu0 %v1186_v16 }
  0x38   : > { %965 = vmatpush3.msra.mxu0 %v1285_v7 }
  0x39   : > { %966 = vmatprep.subr.mxu0 %v1186_v16 }
  0x3a   : > { %967 = vmatpush3.msra.mxu0 %v1283_v6 }
  0x3b   : > { %968 = vmatprep.subr.mxu0 %v1186_v16 }
  0x3c   : > { %969 = vmatpush3.msra.mxu0 %v1281_v5 }
  0x3d   : > { %970 = vmatprep.subr.mxu0 %v1186_v16 }
  0x3e   : > { %971 = vmatpush3.msra.mxu0 %v1279_v4 }
  0x3f   : > { %972 = vmatprep.subr.mxu0 %v1186_v16 }
  0x40   : > { %973 = vmatpush3.msra.mxu0 %v1277_v3 }
  0x41   : > { %974 = vmatprep.subr.mxu0 %v1186_v16 }
  0x42   : > { %975 = vmatpush3.msra.mxu0 %v1275_v2 }
  0x43   : > { %976 = vmatprep.subr.mxu0 %v1186_v16 }
  0x44   : > { %977 = vmatpush3.msra.mxu0 %v1273_v1 }
  0x45   : > { %978 = vmatprep.subr.mxu0 %v1186_v16 }
  0x46   : > { %979 = vmatpush3.msra.mxu0 %v1271_v0 }
  0x47   : > { %981 = vmatmul.mubr.f32.vlgmr.msra.gmra.mxu0 %v287_v17 }
 0x107   : > { %v354_v18 = vpop.f32.mrf.mxu0 }
 0x108   : > { %359 = vst [vmem:[#allocation2] sm:$0xff] %v354_v18 }
 0x109   : > { %v982_v19 = vpop.f32.mrf.mxu0 }
 0x10a PF: > { %p890_p2 = scmp.le.s32.totalorder %s1173_s18, 0 }
 0x10b   : > { %s891_s10 = sadd.s32 (!%p890_p2), 4294967295, %s1173_s18  ;;  %s893_s13 = sshll.u32 (!%p890_p2), %s1173_s18, 3 }
 0x10c   : > { %363 = sbr.rel (%p890_p2) target bundleno = 501 (0x1f5), region = 52  ;;  %s892_s11 = sshll.u32 (!%p890_p2), %s891_s10, 3 }
 0x10d   : > { %s366_s12 = scalar_lea.vmem (!%p890_p2), [#allocation2], %s892_s11  ;;  %s440_s14 = scalar_lea.vmem (!%p890_p2), [#allocation2], %s893_s13 }
 0x111   : > { %v1188_v20 = vmov 0.0   ;;  %vm1189_vm1 = vmmov 0   ;;  %v367_v21 = vld [vmem:[%s366_s12] sm:$0xff] }
 0x112   : > { %983 = vmatprep.subr.mxu0 %v1188_v20  ;;  %1015 = vmatprep.mubr.msk.f32.mxu0 %vm1189_vm1, %v1188_v20 }
 0x113   : > { %984 = vmatpush3.msra.mxu0 %v282_v15 }
 0x114   : > { %985 = vmatprep.subr.mxu0 %v1188_v20 }
 0x115   : > { %986 = vmatpush3.msra.mxu0 %v281_v14 }
 0x116   : > { %987 = vmatprep.subr.mxu0 %v1188_v20 }
 0x117   : > { %988 = vmatpush3.msra.mxu0 %v280_v13 }
 0x118   : > { %989 = vmatprep.subr.mxu0 %v1188_v20 }
 0x119   : > { %990 = vmatpush3.msra.mxu0 %v279_v12 }
 0x11a   : > { %991 = vmatprep.subr.mxu0 %v1188_v20 }
 0x11b   : > { %992 = vmatpush3.msra.mxu0 %v278_v11 }
 0x11c   : > { %993 = vmatprep.subr.mxu0 %v1188_v20 }
 0x11d   : > { %994 = vmatpush3.msra.mxu0 %v1291_v10 }
 0x11e   : > { %995 = vmatprep.subr.mxu0 %v1188_v20 }
 0x11f   : > { %996 = vmatpush3.msra.mxu0 %v1289_v9 }
 0x120   : > { %997 = vmatprep.subr.mxu0 %v1188_v20 }
 0x121   : > { %998 = vmatpush3.msra.mxu0 %v1287_v8 }
 0x122   : > { %999 = vmatprep.subr.mxu0 %v1188_v20 }
 0x123   : > { %1000 = vmatpush3.msra.mxu0 %v1285_v7 }
 0x124   : > { %1001 = vmatprep.subr.mxu0 %v1188_v20 }
 0x125   : > { %1002 = vmatpush3.msra.mxu0 %v1283_v6 }
 0x126   : > { %1003 = vmatprep.subr.mxu0 %v1188_v20 }
 0x127   : > { %1004 = vmatpush3.msra.mxu0 %v1281_v5 }
 0x128   : > { %1005 = vmatprep.subr.mxu0 %v1188_v20 }
 0x129   : > { %1006 = vmatpush3.msra.mxu0 %v1279_v4 }
 0x12a   : > { %1007 = vmatprep.subr.mxu0 %v1188_v20 }
 0x12b   : > { %1008 = vmatpush3.msra.mxu0 %v1277_v3 }
 0x12c   : > { %1009 = vmatprep.subr.mxu0 %v1188_v20 }
 0x12d   : > { %1010 = vmatpush3.msra.mxu0 %v1275_v2 }
 0x12e   : > { %1011 = vmatprep.subr.mxu0 %v1188_v20 }
 0x12f   : > { %1012 = vmatpush3.msra.mxu0 %v1273_v1 }
 0x130   : > { %1013 = vmatprep.subr.mxu0 %v1188_v20 }
 0x131   : > { %1014 = vmatpush3.msra.mxu0 %v1271_v0 }
 0x132   : > { %1016 = vmatmul.mubr.f32.vlgmr.msra.gmra.mxu0 %v367_v21 }
 0x1f2   : > { %v434_v22 = vpop.f32.mrf.mxu0 }
 0x1f3   : > { %441 = vst [vmem:[%s440_s14] sm:$0xff] %v434_v22 }
 0x1f4   : > { %v1017_v23 = vpop.f32.mrf.mxu0 }
 0x1f5 PF: > { %p894_p3 = scmp.ne.s32.totalorder %s1173_s18, 1 }
 0x1f7   : > { %445 = sbr.rel (%p894_p3) target bundleno = 714 (0x2ca), region = 56 }
 0x1fc   : > { %v1097_v24 = vld [vmem:[#allocation2] ss:$8 sps:$4 sm:$0xff]   ;;  %v1190_v25 = vmov 0.0   ;;  %v1099_v26 = vld [vmem:[#allocation2 + $0x4] ss:$8 sps:$4 sm:$0xff]   ;;  %vm461_vm2 = vcmask 64512  }
 0x1fd   : > { %1018 = vmatprep.subr.mxu0 %v1190_v25  ;;  %1023 = vmatprep.subr.mxu1 %v1190_v25  ;;  %v458_v27 = vld [vmem:[%s1363_s3] sm:$0xff]  ;;  %vm1191_vm3 = vmmov 0   ;;  %vm611_vm4 = vcmask 1043456   ;;  %vm607_vm5 = vcmask 31744   ;;  %v1192_v32 = vmov 0  }
 0x1fe   : > { %v447_v28 = vld [vmem:[%s1360_s0] sm:$0xff]  ;;  %1019 = vmatpush3.msra.mxu0 %v1097_v24  ;;  %1020 = vmatprep.mubr.msk.f32.mxu0 %vm1191_vm3, %v1190_v25 }
 0x1ff   : > { %v449_v29 = vcombine.high %v447_v28, %v447_v28  ;;  %1024 = vmatpush3.msra.mxu1 %v1099_v26  ;;  %1025 = vmatprep.mubr.msk.f32.mxu1 %vm1191_vm3, %v1190_v25  ;;  %v457_v30 = vld [vmem:[%s1362_s2] sm:$0xff] }
 0x200   : > { %1021 = vmatmul.mubr.msk.f32.vlgmr.msra.gmra.mxu0 %vm461_vm2, %v458_v27  ;;  %1026 = vmatmul.mubr.msk.f32.vlgmr.msra.gmra.mxu1 %vm461_vm2, %v458_v27  ;;  %v756_v31 = vld [vmem:[%s1364_s4] sm:$0xff] }
 0x201   : > { %1028 = vmatprep.subr.mxu0 %v1190_v25  ;;  %1033 = vmatprep.subr.mxu1 %v1190_v25 }
 0x202   : > { %1029 = vmatpush3.msk.msra.mxu0 %vm611_vm4, %v447_v28  ;;  %1034 = vmatpush3.msk.msra.mxu1 %vm611_vm4, %v449_v29 }
 0x203   : > { %1030 = vmatprep.mubr.msk.f32.mxu0 %vm1191_vm3, %v1190_v25  ;;  %1035 = vmatprep.mubr.msk.f32.mxu1 %vm1191_vm3, %v1190_v25 }
 0x204   : > { %1031 = vmatmul.mubr.msk.f32.vlgmr.msra.gmra.mxu0 %vm607_vm5, %v457_v30  ;;  %1036 = vmatmul.mubr.msk.f32.vlgmr.msra.gmra.mxu1 %vm607_vm5, %v457_v30 }
 0x205   : > { %1096 = vset.pattern.permute.xlu0 %v1192_v32 }
 0x206   : > { %759 = vperm.xlu0 %1096, %v756_v31  }
 0x281   : > { %v760_v37 = vpop.permute.xlu0 %759 }
 0x2c0   : > { %v531_v33 = vpop.f32.mrf.mxu0  ;;  %v603_v34 = vpop.f32.mrf.mxu1 }
 0x2c2   : > { %v1022_v35 = vpop.f32.mrf.mxu0  ;;  %v1027_v36 = vpop.f32.mrf.mxu1 }
 0x2c4   : > { %v680_v38 = vpop.f32.mrf.mxu0  ;;  %v752_v39 = vpop.f32.mrf.mxu1 }
 0x2c5   : > { %v681_v40 = vadd.f32 %v680_v38, %v531_v33  ;;  %v753_v41 = vadd.f32 %v752_v39, %v603_v34 }
 0x2c6   : > { %v1032_v42 = vpop.f32.mrf.mxu0  ;;  %v1037_v43 = vpop.f32.mrf.mxu1 }
 0x2c7   : > { %v762_v44 = vadd.f32 %v760_v37, %v681_v40  ;;  %v763_v45 = vadd.f32 %v760_v37, %v753_v41 }
 0x2c9   : > { %764 = vst [vmem:[#allocation6] sm:$0xff] %v762_v44  ;;  %765 = vst [vmem:[#allocation6 + $0x8] sm:$0xff] %v763_v45 }
 0x2ca PF: > { %p1337_p4 = scmp.eq.s32.totalorder %s882_s21, 1  ;;  %s1193_s29 = smov [#allocation6]  }
 0x2cb   : > { %s783_s30 = sshll.u32 %s1193_s29, 4  ;;  %s784_s30 = int_to_ptr.vmem [resolvable:$true] %s783_s30 }
 0x2cc   : > { %s1127_s6 = scalar_lea.vmem %s784_s30, 256  ;;  %s1133_s7 = scalar_lea.vmem %s784_s30, 512 }
 0x2cd   : > { %p1128_p5 = scmp.ne.s32.totalorder %s784_s30, %s1127_s6  ;;  %p1134_p8 = scmp.lt.s32.totalorder %s784_s30, %s784_s30 }
 0x2ce   : > { %p1135_p9 = scmp.lt.s32.totalorder %s1133_s7, %s1127_s6 }
 0x2cf   : > { %p1129_p6 = pnand %p1128_p5, %p1337_p4 }
 0x2d0   : > { %p1136_p10 = por %p1135_p9, %p1134_p8 }
 0x2d1   : > { %p1130_p7 = pneg %p1129_p6 }
 0x2d3   : > { %p1137_p11 = pnand %p1136_p10, %p1130_p7 }
 0x2d5   : > { %1140 = shalt.err (!%p1137_p11)
}
 0x2d6   : > { %s1194_s8 = smov 128   ;;  %s1195_s21 = smov 8  }
 0x2d7   : > { %1043 = dma.vmem_to_hbm [thread:$0]  (%p1337_p4), %s784_s30, 256, %s1365_s5, [#allocation5], %s1194_s8, %s1194_s8, %s1195_s21  }
 0x2d8 PF: > { %p1057_p12 = scmp.ge.s32.totalorder %s1181_s20, 2  ;;  %p1058_p13 = scmp.eq.s32.totalorder %s883_s22, 1 }
 0x2da   : > { %p1051_p0 = pnand %p1058_p13, %p1057_p12 }
 0x2dc   : > { %p1052_p1 = pneg %p1051_p0 }
 0x2de   : > { %1168 = dma.done.wait (%p1052_p1), [#allocation5], 256  }
 0x2df   : > { %1170 = vsyncadd (%p1052_p1), [#allocation5], 4294967040  ;;  %s19_s20 = sadd.s32 1, %s1181_s20   ;;  %s1369_s18 = smov %s1177_s19 }
 0x2e0   : > { %p16_p2 = scmp.ge.s32.totalorder %s19_s20, 4   ;;  %s1370_s19 = smov %s1372_s23 }
 0x2e2   :  { %18 = sbr.rel (!%p16_p2) target bundleno = 4 (0x4), region = 98 }
 0x2e7   :  { %804 = vsyncpa [#allocation4], 1 }
 0x2e8   :  { %806 = vsyncpa [#allocation4 + $0x1], 1 }
 0x2e9   :  { %807 = vsyncpa [#allocation5], 1 }
 0x2ea   :  { %809 = vsyncpa [#allocation5 + $0x1], 1 }

</bundles_post_ra>
